<compile_context>
chip_gen: v7x
topology: tpu7x:2x2x1
jax: 0.10.0
libtpu: 0.0.40
codegen_flags: <defaults>
</compile_context>

<pallas_src>
from math import sqrt

import jax
import jax.numpy as jnp
from jax import lax
from jax.experimental import pallas as pl
from jax.experimental.pallas import tpu as pltpu

_LANE = 128
_SUBLANE = 8


def _round_up(x, m):
    return ((x + m - 1) // m) * m


# ----------------------------------------------------------------------------
# Portable counter-based RNG (murmur3-style fmix32) for dropout.
# Pure jnp/lax uint32 ops -> works on real TPU and under interpret mode.
# ----------------------------------------------------------------------------
def _uniform_bits(shape, row_offset, salt):
    """uint32 hash of (global_row, col, salt) per element of `shape`."""
    r = lax.broadcasted_iota(jnp.int32, shape, 0) + row_offset
    c = lax.broadcasted_iota(jnp.int32, shape, 1)
    h = (r.astype(jnp.uint32) * jnp.uint32(0x9E3779B1)
         ^ c.astype(jnp.uint32) * jnp.uint32(0x85EBCA77)
         ^ jnp.uint32(salt))
    h = h ^ (h >> 16)
    h = h * jnp.uint32(0x85EBCA6B)
    h = h ^ (h >> 13)
    h = h * jnp.uint32(0xC2B2AE35)
    h = h ^ (h >> 16)
    return h


# ----------------------------------------------------------------------------
# Fused MLP kernel (all layers for one row tile)
# ----------------------------------------------------------------------------
def _make_mlp_kernel(n_layers, rates, seed, tm):
    rates = tuple(float(r) for r in rates)
    seed = int(seed) & 0xFFFFFFFF

    def kernel(x_ref, *wb_and_out):
        o_ref = wb_and_out[-1]
        wb = wb_and_out[:-1]                     # (w0, b0, w1, b1, ...)
        h = x_ref[...].astype(jnp.float32)       # (tm, K0p)
        row0 = pl.program_id(0) * tm             # global row offset of this tile

        for li in range(n_layers):
            w = wb[2 * li][...]                  # (Kp, Np) bf16, VMEM-resident
            b = wb[2 * li + 1][...]              # (1, Np)  f32
            y = jnp.dot(h.astype(jnp.bfloat16), w,
                        preferred_element_type=jnp.float32)
            y = jnp.maximum(y + b, 0.0)          # Linear + ReLU (f32 accumulate)

            rate = rates[li]
            if rate > 0.0:                       # dropout (training mode only)
                salt = (seed * 0x9E3779B1 + (li + 1) * 0x7F4A7C15) & 0xFFFFFFFF
                bits = _uniform_bits(y.shape, row0, salt)
                thr = jnp.uint32(min(int(rate * (2 ** 32)), 2 ** 32 - 1))
                keep = bits >= thr               # integer-threshold mask
                y = jnp.where(keep, y * (1.0 / (1.0 - rate)), 0.0)
            h = y

        o_ref[...] = h.astype(o_ref.dtype)

    return kernel


# ----------------------------------------------------------------------------
# Wrapper: one pallas_call for the whole MLP
# ----------------------------------------------------------------------------
def mlp_forward(x, params, *, dropout=0.0, training=False, seed=0):
    """x: (..., E) f32 -> (..., features[-1]) f32. ReLU after every Linear,
    dropout after every activation when training and dropout > 0 (matches
    the PyTorch module)."""
    lead = x.shape[:-1]
    feats = [params[0][0].shape[0]] + [w.shape[1] for w, _ in params]
    assert x.shape[-1] == feats[0]
    n_layers = len(params)

    x2d = x.reshape(-1, feats[0]).astype(jnp.float32)
    M = x2d.shape[0]

    # One-time padding: feature dims -> lane multiples, rows -> tile multiple.
    pad_feats = [_round_up(f, _LANE) for f in feats]
    tm = min(512, _round_up(max(M, 1), _SUBLANE))   # big row tile (v5e/v6e);
    Mp = _round_up(M, tm)                           # still fine for v7x at these sizes
    x_p = jnp.pad(x2d, ((0, Mp - M), (0, pad_feats[0] - feats[0])))

    operands = [x_p]
    in_specs = [pl.BlockSpec((tm, pad_feats[0]), lambda i: (i, 0))]
    for li, (w, b) in enumerate(params):
        kp, np_ = pad_feats[li], pad_feats[li + 1]
        wp = jnp.pad(w, ((0, kp - w.shape[0]), (0, np_ - w.shape[1]))
                     ).astype(jnp.bfloat16)                       # bf16 weights
        bp = jnp.pad(b, (0, np_ - b.shape[0])).reshape(1, np_).astype(jnp.float32)
        operands += [wp, bp]
        in_specs += [pl.BlockSpec((kp, np_), lambda i: (0, 0)),   # VMEM-resident
                     pl.BlockSpec((1, np_), lambda i: (0, 0))]

    rates = tuple(float(dropout) if (training and dropout > 0.0) else 0.0
                  for _ in range(n_layers))
    kernel = _make_mlp_kernel(n_layers, rates, seed, tm)

    out = pl.pallas_call(
        kernel,
        out_shape=jax.ShapeDtypeStruct((Mp, pad_feats[-1]), jnp.float32),
        grid=(Mp // tm,),
        in_specs=in_specs,
        out_specs=pl.BlockSpec((tm, pad_feats[-1]), lambda i: (i, 0)),
        compiler_params=pltpu.CompilerParams(
            dimension_semantics=("parallel",)),   # row tiles independent (megacore)
    )(*operands)

    return out[:M, :feats[-1]].reshape(*lead, feats[-1])


# ----------------------------------------------------------------------------
# Params + references
# ----------------------------------------------------------------------------
def init_mlp_params(features, key):
    """nn.Linear-style init; weights stored (in, out) so no transpose in kernel."""
    params = []
    for k_in, k_out in zip(features[:-1], features[1:]):
        key, wk, bk = jax.random.split(key, 3)
        bound = 1.0 / sqrt(k_in)
        w = jax.random.uniform(wk, (k_in, k_out), jnp.float32, -bound, bound)
        b = jax.random.uniform(bk, (k_out,), jnp.float32, -bound, bound)
        params.append((w, b))
    return params


def mlp_reference_bf16(x, params):
    """Matches the kernel's bf16-operand / f32-accumulate math (eval mode)."""
    h = x.astype(jnp.float32)
    for w, b in params:
        h = jnp.maximum(
            jnp.dot(h.astype(jnp.bfloat16), w.astype(jnp.bfloat16),
                    preferred_element_type=jnp.float32) + b, 0.0)
    return h


def mlp_reference_f32(x, params):
    h = x
    for w, b in params:
        h = jnp.maximum(jnp.dot(h, w) + b, 0.0)
    return h


# ----------------------------------------------------------------------------
if __name__ == "__main__":
    key = jax.random.PRNGKey(0)
    features = [32, 64, 32]          # MLP([32, 64, 32], nn.ReLU, dropout=0.1)
    dropout = 0.1

    pkey, xkey = jax.random.split(key)
    params = init_mlp_params(features, pkey)

    # x of shape (..., E): batch=2, seq=8, hidden=32
    x = jax.random.normal(xkey, (2, 8, features[0]), jnp.float32)

    # Eval-mode forward (dropout is identity -> deterministic, checkable).
    y = jax.block_until_ready(mlp_forward(x, params, dropout=dropout, training=False))
    assert y.shape == (2, 8, features[-1])

    y_ref = mlp_reference_bf16(x.reshape(-1, features[0]), params).reshape(y.shape)
    assert jnp.allclose(y, y_ref, atol=5e-3, rtol=5e-3), \
        float(jnp.max(jnp.abs(y - y_ref)))

    y_f32 = mlp_reference_f32(x, params)
    assert jnp.allclose(y, y_f32, atol=5e-2, rtol=5e-2)

    # Training-mode (dropout active): stochastic by design -> shape/finite check.
    y_train = jax.block_until_ready(
        mlp_forward(x, params, dropout=dropout, training=True, seed=1234))
    assert y_train.shape == y.shape
    assert bool(jnp.all(jnp.isfinite(y_train)))

    print("KERNEL_OK")
</pallas_src>

<mosaic_0001>
module attributes {stable_mosaic.version = 11 : i64} {
  func.func @kernel(%arg0: i32, %arg1: memref<16x128xf32, #tpu.memory_space<vmem>>, %arg2: memref<128x128xbf16, #tpu.memory_space<vmem>>, %arg3: memref<1x128xf32, #tpu.memory_space<vmem>>, %arg4: memref<128x128xbf16, #tpu.memory_space<vmem>>, %arg5: memref<1x128xf32, #tpu.memory_space<vmem>>, %arg6: memref<16x128xf32, #tpu.memory_space<vmem>>) attributes {dimension_semantics = [#tpu.dimension_semantics<parallel>], iteration_bounds = array<i64: 1>, scalar_prefetch = 0 : i64, scratch_operands = 0 : i64, tpu.core_type = #tpu.core_type<tc>, window_params = [{transform_indices = @transform_0, window_bounds = array<i64: 16, 128>}, {pipeline_mode = #tpu.pipeline_mode<synchronous>, transform_indices = @transform_1, window_bounds = array<i64: 128, 128>}, {pipeline_mode = #tpu.pipeline_mode<synchronous>, transform_indices = @transform_2, window_bounds = array<i64: 1, 128>}, {pipeline_mode = #tpu.pipeline_mode<synchronous>, transform_indices = @transform_3, window_bounds = array<i64: 128, 128>}, {pipeline_mode = #tpu.pipeline_mode<synchronous>, transform_indices = @transform_4, window_bounds = array<i64: 1, 128>}, {transform_indices = @transform_5, window_bounds = array<i64: 16, 128>}]} {
    %c0 = arith.constant 0 : index
    %c0_0 = arith.constant 0 : index
    %0 = vector.load %arg1[%c0, %c0_0] : memref<16x128xf32, #tpu.memory_space<vmem>>, vector<16x128xf32>
    %c0_1 = arith.constant 0 : index
    %c0_2 = arith.constant 0 : index
    %1 = vector.load %arg2[%c0_1, %c0_2] : memref<128x128xbf16, #tpu.memory_space<vmem>>, vector<128x128xbf16>
    %c0_3 = arith.constant 0 : index
    %c0_4 = arith.constant 0 : index
    %2 = vector.load %arg3[%c0_3, %c0_4] : memref<1x128xf32, #tpu.memory_space<vmem>>, vector<1x128xf32>
    %3 = arith.truncf %0 : vector<16x128xf32> to vector<16x128xbf16>
    %cst = arith.constant dense<0.000000e+00> : vector<16x128xf32>
    %4 = tpu.matmul %3, %1, %cst {dimension_numbers = #tpu.dot_dimension_numbers<[1], [0], [0], [1], [0, 0, 1, 1], [], []>} : vector<16x128xbf16>, vector<128x128xbf16>, vector<16x128xf32> -> vector<16x128xf32>
    %5 = vector.broadcast %2 : vector<1x128xf32> to vector<16x128xf32>
    %6 = arith.addf %4, %5 : vector<16x128xf32>
    %cst_5 = arith.constant 0.000000e+00 : f32
    %7 = vector.broadcast %cst_5 : f32 to vector<16x128xf32>
    %8 = arith.maximumf %6, %7 : vector<16x128xf32>
    %c0_6 = arith.constant 0 : index
    %c0_7 = arith.constant 0 : index
    %9 = vector.load %arg4[%c0_6, %c0_7] : memref<128x128xbf16, #tpu.memory_space<vmem>>, vector<128x128xbf16>
    %c0_8 = arith.constant 0 : index
    %c0_9 = arith.constant 0 : index
    %10 = vector.load %arg5[%c0_8, %c0_9] : memref<1x128xf32, #tpu.memory_space<vmem>>, vector<1x128xf32>
    %11 = arith.truncf %8 : vector<16x128xf32> to vector<16x128xbf16>
    %cst_10 = arith.constant dense<0.000000e+00> : vector<16x128xf32>
    %12 = tpu.matmul %11, %9, %cst_10 {dimension_numbers = #tpu.dot_dimension_numbers<[1], [0], [0], [1], [0, 0, 1, 1], [], []>} : vector<16x128xbf16>, vector<128x128xbf16>, vector<16x128xf32> -> vector<16x128xf32>
    %13 = vector.broadcast %10 : vector<1x128xf32> to vector<16x128xf32>
    %14 = arith.addf %12, %13 : vector<16x128xf32>
    %cst_11 = arith.constant 0.000000e+00 : f32
    %15 = vector.broadcast %cst_11 : f32 to vector<16x128xf32>
    %16 = arith.maximumf %14, %15 : vector<16x128xf32>
    %c0_12 = arith.constant 0 : index
    %c0_13 = arith.constant 0 : index
    %17 = vector.load %arg6[%c0_12, %c0_13] : memref<16x128xf32, #tpu.memory_space<vmem>>, vector<16x128xf32>
    tpu.vector_store %arg6[%c0_12, %c0_13], %16 {strides = array<i32>} : memref<16x128xf32, #tpu.memory_space<vmem>>, vector<16x128xf32>,
    return
  }
  func.func @transform_0(%arg0: i32) -> (i32, i32) {
    %c0_i32 = arith.constant 0 : i32
    %c0_i32_0 = arith.constant 0 : i32
    return %arg0, %c0_i32 : i32, i32
  }
  func.func @transform_1(%arg0: i32) -> (i32, i32) {
    %c0_i32 = arith.constant 0 : i32
    %c0_i32_0 = arith.constant 0 : i32
    %c0_i32_1 = arith.constant 0 : i32
    return %c0_i32, %c0_i32_0 : i32, i32
  }
  func.func @transform_2(%arg0: i32) -> (i32, i32) {
    %c0_i32 = arith.constant 0 : i32
    %c0_i32_0 = arith.constant 0 : i32
    %c0_i32_1 = arith.constant 0 : i32
    return %c0_i32, %c0_i32_0 : i32, i32
  }
  func.func @transform_3(%arg0: i32) -> (i32, i32) {
    %c0_i32 = arith.constant 0 : i32
    %c0_i32_0 = arith.constant 0 : i32
    %c0_i32_1 = arith.constant 0 : i32
    return %c0_i32, %c0_i32_0 : i32, i32
  }
  func.func @transform_4(%arg0: i32) -> (i32, i32) {
    %c0_i32 = arith.constant 0 : i32
    %c0_i32_0 = arith.constant 0 : i32
    %c0_i32_1 = arith.constant 0 : i32
    return %c0_i32, %c0_i32_0 : i32, i32
  }
  func.func @transform_5(%arg0: i32) -> (i32, i32) {
    %c0_i32 = arith.constant 0 : i32
    %c0_i32_0 = arith.constant 0 : i32
    return %arg0, %c0_i32 : i32, i32
  }
}

</mosaic_0001>

<bundles_post_ra>
// kernel: tpu_custom_call.1
= control target key start
LH: loop header
LB: loop body
LE: loop exit
PB: predicated region body
PF: predicated region fallthrough
CT: control target
= control target key end

     0   :  { %10 = vsyncpa [#allocation3], 0  ;;  %s617_s0 = inlined_call_operand.hbm [shape: f32[16,128], index: 0, kind: input, shape index: {}]   ;;  %s618_s1 = inlined_call_operand.hbm [shape: bf16[128,128], index: 1, kind: input, shape index: {}]   ;;  %s619_s2 = inlined_call_operand.vmem [shape: f32[1,128], index: 2, kind: input, shape index: {}]   ;;  %s620_s3 = inlined_call_operand.hbm [shape: bf16[128,128], index: 3, kind: input, shape index: {}]   ;;  %s621_s4 = inlined_call_operand.vmem [shape: f32[1,128], index: 4, kind: input, shape index: {}]   ;;  %s622_s5 = inlined_call_operand.hbm [shape: f32[16,128], index: 5, kind: output, shape index: {}]  }
   0x1   :  { %11 = vsyncpa [#allocation6], 0 }
   0x2   :  { %12 = vsyncpa [#allocation4], 0  ;;  %s511_s18 = smov [#allocation5]   ;;  %s417_s22 = scalar_lea.hbm %s618_s1, 1024 }
   0x3   :  { %s30_s19 = sshll.u32 %s511_s18, 4  ;;  %p418_p0 = scmp.ne.s32.totalorder %s618_s1, %s417_s22  ;;  %s31_s19 = int_to_ptr.vmem [resolvable:$true] %s30_s19 }
   0x4   :  { %p421_p1 = scmp.lt.u32.totalorder %s417_s22, %s618_s1 }
   0x6   :  { %p423_p2 = pnand %p421_p1, %p418_p0 }
   0x8   :  { %426 = shalt.err (!%p423_p2)
}
   0x9   :  { %s427_s27 = scalar_lea.vmem %s31_s19, 1024  ;;  %p432_p4 = scmp.lt.s32.totalorder %s31_s19, %s31_s19 }
   0xa   :  { %p428_p3 = scmp.ne.s32.totalorder %s31_s19, %s427_s27  ;;  %p433_p5 = scmp.lt.s32.totalorder %s427_s27, %s427_s27 }
   0xc   :  { %p434_p6 = por %p433_p5, %p432_p4 }
   0xe   :  { %p435_p7 = pnand %p434_p6, %p428_p3 }
  0x10   :  { %438 = shalt.err (!%p435_p7)
}
  0x11   :  { %s512_s28 = smov 64   ;;  %s513_s29 = smov 4  }
  0x12   :  { %36 = dma.hbm_to_vmem [thread:$0]  %s618_s1, 1024, %s31_s19, [#allocation6], %s512_s28, %s512_s28, %s513_s29  }
  0x13   :  { %s514_s7 = smov [#allocation2]   ;;  %s439_s11 = scalar_lea.hbm %s617_s0, 256 }
  0x14   :  { %s18_s8 = sshll.u32 %s514_s7, 4  ;;  %p440_p8 = scmp.ne.s32.totalorder %s617_s0, %s439_s11  ;;  %s19_s8 = int_to_ptr.vmem [resolvable:$true] %s18_s8 }
  0x15   :  { %p443_p9 = scmp.lt.u32.totalorder %s439_s11, %s617_s0 }
  0x17   :  { %p445_p10 = pnand %p443_p9, %p440_p8 }
  0x19   :  { %448 = shalt.err (!%p445_p10)
}
  0x1a   :  { %s449_s16 = scalar_lea.vmem %s19_s8, 256  ;;  %p454_p12 = scmp.lt.s32.totalorder %s19_s8, %s19_s8 }
  0x1b   :  { %p450_p11 = scmp.ne.s32.totalorder %s19_s8, %s449_s16  ;;  %p455_p13 = scmp.lt.s32.totalorder %s449_s16, %s449_s16 }
  0x1d   :  { %p456_p0 = por %p455_p13, %p454_p12 }
  0x1f   :  { %p457_p1 = pnand %p456_p0, %p450_p11 }
  0x21   :  { %460 = shalt.err (!%p457_p1)
}
  0x22   :  { %s515_s1 = smov 128   ;;  %s516_s17 = smov 8  }
  0x23   :  { %24 = dma.hbm_to_vmem [thread:$0]  %s617_s0, 256, %s19_s8, [#allocation3], %s515_s1, %s515_s1, %s516_s17  }
  0x24   :  { %s517_s20 = smov [#allocation7]   ;;  %s461_s24 = scalar_lea.hbm %s620_s3, 1024 }
  0x25   :  { %s44_s21 = sshll.u32 %s517_s20, 4  ;;  %p462_p2 = scmp.ne.s32.totalorder %s620_s3, %s461_s24  ;;  %s45_s21 = int_to_ptr.vmem [resolvable:$true] %s44_s21 }
  0x26   :  { %p465_p3 = scmp.lt.u32.totalorder %s461_s24, %s620_s3 }
  0x28   :  { %p467_p4 = pnand %p465_p3, %p462_p2 }
  0x2a   :  { %470 = shalt.err (!%p467_p4)
}
  0x2b   :  { %s471_s6 = scalar_lea.vmem %s45_s21, 1024  ;;  %p476_p6 = scmp.lt.s32.totalorder %s45_s21, %s45_s21 }
  0x2c   :  { %p472_p5 = scmp.ne.s32.totalorder %s45_s21, %s471_s6  ;;  %p477_p7 = scmp.lt.s32.totalorder %s471_s6, %s471_s6 }
  0x2e   :  { %p478_p8 = por %p477_p7, %p476_p6 }
  0x30   :  { %p479_p9 = pnand %p478_p8, %p472_p5 }
  0x32   :  { %482 = shalt.err (!%p479_p9)
}
  0x33   :  { %50 = dma.hbm_to_vmem [thread:$0]  %s620_s3, 1024, %s45_s21, [#allocation6], %s512_s28, %s512_s28, %s513_s29  }
  0x34   :  { %505 = dma.done.wait [#allocation3], 256  }
  0x35   :  { %506 = vsyncadd [#allocation3], 4294967040 }
  0x36   :  { %507 = dma.done.wait [#allocation6], 2048  }
  0x37   :  { %508 = vsyncadd [#allocation6], 4294965248  ;;  %v518_v0 = vmov 0.0   ;;  %vm519_vm0 = vmmov 0   ;;  %v401_v1 = vld [vmem:[#allocation5] sm:$0xff]   ;;  %v402_v2 = vld [vmem:[#allocation5 + $0x8] sm:$0xff]  }
  0x38   :  { %351 = vmatprep.subr.bf16.mxu0 %v518_v0  ;;  %367 = vmatprep.mubr.msk.bf16.mxu0 %vm519_vm0, %v518_v0  ;;  %v403_v3 = vld [vmem:[#allocation5 + $0x10] sm:$0xff]   ;;  %v409_v4 = vld [vmem:[#allocation7] sm:$0xff]   ;;  %v404_v5 = vld [vmem:[#allocation5 + $0x18] sm:$0xff]   ;;  %s520_s9 = smov [#allocation8]  }
  0x39   :  { %371 = vmatprep.subr.bf16.mxu1 %v518_v0  ;;  %387 = vmatprep.mubr.msk.bf16.mxu1 %vm519_vm0, %v518_v0  ;;  %v410_v6 = vld [vmem:[#allocation7 + $0x8] sm:$0xff]   ;;  %v405_v7 = vld [vmem:[#allocation5 + $0x20] sm:$0xff]   ;;  %v411_v8 = vld [vmem:[#allocation7 + $0x10] sm:$0xff]  }
  0x3a   :  { %352 = vmatpush3.bf16.msra.mxu0 %v401_v1  ;;  %372 = vmatpush3.bf16.msra.mxu1 %v409_v4  ;;  %v406_v9 = vld [vmem:[#allocation5 + $0x28] sm:$0xff]   ;;  %v412_v10 = vld [vmem:[#allocation7 + $0x18] sm:$0xff]   ;;  %v407_v11 = vld [vmem:[#allocation5 + $0x30] sm:$0xff]  }
  0x3b   :  { %353 = vmatprep.subr.bf16.mxu0 %v518_v0  ;;  %373 = vmatprep.subr.bf16.mxu1 %v518_v0  ;;  %v413_v12 = vld [vmem:[#allocation7 + $0x20] sm:$0xff]   ;;  %v408_v13 = vld [vmem:[#allocation5 + $0x38] sm:$0xff]   ;;  %v63_v14 = vld [vmem:[#allocation2] sm:$0xff] }
  0x3c   :  { %v64_v15 = vld [vmem:[#allocation2 + $0x8] sm:$0xff]  ;;  %v414_v16 = vld [vmem:[#allocation7 + $0x28] sm:$0xff]   ;;  %v415_v18 = vld [vmem:[#allocation7 + $0x30] sm:$0xff]  }
  0x3d   :  { %v82_v17 = vpack.c.bf16 %v64_v15, %v63_v14  ;;  %v416_v19 = vld [vmem:[#allocation7 + $0x38] sm:$0xff]   ;;  %v315_v20 = vld [vmem:[%s619_s2] ss:$0 sm:$0xff]  ;;  %s302_s2 = sshll.u32 %s520_s9, 4  ;;  %s303_s2 = int_to_ptr.vmem [resolvable:$true] %s302_s2 }
  0x3e   :  { %354 = vmatpush3.bf16.msra.mxu0 %v402_v2  ;;  %374 = vmatpush3.bf16.msra.mxu1 %v410_v6  ;;  %v324_v30 = vld [vmem:[%s621_s4] ss:$0 sm:$0xff]  ;;  %s483_s10 = scalar_lea.vmem %s303_s2, 256  ;;  %p488_p11 = scmp.lt.s32.totalorder %s303_s2, %s303_s2 }
  0x3f   :  { %355 = vmatprep.subr.bf16.mxu0 %v518_v0  ;;  %375 = vmatprep.subr.bf16.mxu1 %v518_v0  ;;  %p484_p10 = scmp.ne.s32.totalorder %s303_s2, %s483_s10  ;;  %p489_p12 = scmp.lt.s32.totalorder %s483_s10, %s483_s10 }
  0x41   :  { %p490_p13 = por %p489_p12, %p488_p11 }
  0x42   :  { %356 = vmatpush3.bf16.msra.mxu0 %v403_v3  ;;  %376 = vmatpush3.bf16.msra.mxu1 %v411_v8 }
  0x43   :  { %357 = vmatprep.subr.bf16.mxu0 %v518_v0  ;;  %377 = vmatprep.subr.bf16.mxu1 %v518_v0  ;;  %p491_p0 = pnand %p490_p13, %p484_p10 }
  0x46   :  { %358 = vmatpush3.bf16.msra.mxu0 %v404_v5  ;;  %378 = vmatpush3.bf16.msra.mxu1 %v412_v10 }
  0x47   :  { %359 = vmatprep.subr.bf16.mxu0 %v518_v0  ;;  %379 = vmatprep.subr.bf16.mxu1 %v518_v0 }
  0x4a   :  { %360 = vmatpush3.bf16.msra.mxu0 %v405_v7  ;;  %380 = vmatpush3.bf16.msra.mxu1 %v413_v12 }
  0x4b   :  { %361 = vmatprep.subr.bf16.mxu0 %v518_v0  ;;  %381 = vmatprep.subr.bf16.mxu1 %v518_v0 }
  0x4e   :  { %362 = vmatpush3.bf16.msra.mxu0 %v406_v9  ;;  %382 = vmatpush3.bf16.msra.mxu1 %v414_v16 }
  0x4f   :  { %363 = vmatprep.subr.bf16.mxu0 %v518_v0  ;;  %383 = vmatprep.subr.bf16.mxu1 %v518_v0 }
  0x52   :  { %364 = vmatpush3.bf16.msra.mxu0 %v407_v11  ;;  %384 = vmatpush3.bf16.msra.mxu1 %v415_v18 }
  0x53   :  { %365 = vmatprep.subr.bf16.mxu0 %v518_v0  ;;  %385 = vmatprep.subr.bf16.mxu1 %v518_v0 }
  0x56   :  { %366 = vmatpush3.bf16.msra.mxu0 %v408_v13  ;;  %386 = vmatpush3.bf16.msra.mxu1 %v416_v19 }
  0x59   :  { %368 = vmatmul.mubr.bf16.vlgmr.msra.gmra.mrb[0].mxu0 %v82_v17 }
 0x12c   :  { %v171_v21 = vpop.f32.mrb[0].mxu0 }
 0x12d   :  { %v172_v22 = vadd.f32 %v315_v20, %v171_v21  ;;  %v369_v23 = vpop.f32.mrb[1].mxu0 }
 0x12e   :  { %v174_v24 = vpop.f32.mrb[2].mxu0 }
 0x12f   :  { %v175_v25 = vadd.f32 %v315_v20, %v174_v24  ;;  %v370_v26 = vpop.f32.mrb[3].mxu0  ;;  %v178_v27 = vmax.f32 %v172_v22, 0.0 }
 0x131   :  { %v179_v28 = vmax.f32 %v175_v25, 0.0 }
 0x133   :  { %v197_v29 = vpack.c.bf16 %v179_v28, %v178_v27 }
 0x135   :  { %388 = vmatmul.mubr.bf16.vlgmr.msra.gmra.mrb[0].mxu1 %v197_v29 }
 0x208   :  { %v286_v31 = vpop.f32.mrb[0].mxu1 }
 0x209   :  { %v287_v32 = vadd.f32 %v324_v30, %v286_v31  ;;  %v389_v33 = vpop.f32.mrb[1].mxu1 }
 0x20a   :  { %v289_v34 = vpop.f32.mrb[2].mxu1 }
 0x20b   :  { %v293_v35 = vmax.f32 %v287_v32, 0.0  ;;  %v290_v36 = vadd.f32 %v324_v30, %v289_v34  ;;  %v390_v37 = vpop.f32.mrb[3].mxu1 }
 0x20d   :  { %295 = vst [vmem:[#allocation8] sm:$0xff] %v293_v35  ;;  %v294_v38 = vmax.f32 %v290_v36, 0.0 }
 0x20f   :  { %296 = vst [vmem:[#allocation8 + $0x8] sm:$0xff] %v294_v38 }
 0x210   :  { %494 = shalt.err (!%p491_p0)
}
 0x211   :  { %s495_s12 = scalar_lea.hbm %s622_s5, 256 }
 0x212   :  { %p496_p1 = scmp.ne.s32.totalorder %s622_s5, %s495_s12  ;;  %p499_p2 = scmp.lt.u32.totalorder %s495_s12, %s622_s5 }
 0x214   :  { %p501_p3 = pnand %p499_p2, %p496_p1 }
 0x216   :  { %504 = shalt.err (!%p501_p3)
}
 0x217   :  { %308 = dma.vmem_to_hbm [thread:$0]  %s303_s2, 256, %s622_s5, [#allocation4], %s515_s1, %s515_s1, %s516_s17  }
 0x218   :  { %509 = dma.done.wait [#allocation4], 256  }
 0x219   :  { %510 = vsyncadd [#allocation4], 4294967040 }
 0x21a   :  { %312 = vsyncpa [#allocation3], 1 }
 0x21b   :  { %313 = vsyncpa [#allocation6], 1 }
 0x21c   :  { %314 = vsyncpa [#allocation4], 1 }

</bundles_post_ra>
